<compile_context>
chip_gen: v7x
topology: tpu7x:2x2x1
jax: 0.10.0
libtpu: 0.0.40
codegen_flags: <defaults>
</compile_context>

<pallas_src>
import functools

import jax
import jax.numpy as jnp
from jax.experimental import pallas as pl
from jax.experimental.pallas import tpu as pltpu

_LANE = 128
_HAS_BUFFERED = hasattr(pl, "Buffered")


def _round_up(n: int, m: int) -> int:
    return ((n + m - 1) // m) * m


def _sublane(dtype) -> int:
    return 16 if jnp.dtype(dtype) == jnp.bfloat16 else 8


def _vmem_capacity_bytes() -> int:
    try:
        return int(pltpu.get_tpu_info().vmem_capacity_bytes)
    except Exception:
        return 64 * 1024 * 1024  # conservative fallback (v7x per-TC VMEM)


def _maybe_pad2d(a, rows: int, cols: int):
    pr, pc = rows - a.shape[0], cols - a.shape[1]
    if pr or pc:
        a = jnp.pad(a, ((0, pr), (0, pc)))
    return a


def pad_params(w1, b1, w2, b2):
    """Pad weights/biases to lane (128) multiples. Call ONCE at param load."""
    in_f, hid = w1.shape
    out_f = w2.shape[1]
    in_p, hid_p, out_p = (_round_up(d, _LANE) for d in (in_f, hid, out_f))
    return (_maybe_pad2d(w1, in_p, hid_p),
            _maybe_pad2d(b1, 1, hid_p),
            _maybe_pad2d(w2, hid_p, out_p),
            _maybe_pad2d(b2, 1, out_p))


# --------------------------------------------------------------------------
# Kernels
# --------------------------------------------------------------------------
def _mlp_kernel_resident(x_ref, w1_ref, b1_ref, w2_ref, b2_ref, o_ref, *,
                         hid_chunk):
    """out = ReLU(x @ W1 + b1) @ W2 + b2 with fully VMEM-resident weights.

    The hidden dim is processed in `hid_chunk`-wide slabs so only a
    (tb, hid_chunk) f32 slab (plus its cast copy) is live at any time.
    """
    x = x_ref[...]
    hid_p = w1_ref.shape[1]
    acc = jnp.zeros((x.shape[0], o_ref.shape[1]), jnp.float32)
    for c0 in range(0, hid_p, hid_chunk):
        cs = min(hid_chunk, hid_p - c0)
        h = jnp.dot(x, w1_ref[:, c0:c0 + cs],
                    preferred_element_type=jnp.float32)
        h = jnp.maximum(h + b1_ref[:, c0:c0 + cs], 0.0)
        # Cast back so bf16 inputs keep both matmuls on the fast MXU path.
        acc = acc + jnp.dot(h.astype(x.dtype), w2_ref[c0:c0 + cs, :],
                            preferred_element_type=jnp.float32)
    o_ref[...] = (acc + b2_ref[...]).astype(o_ref.dtype)


def _mlp_kernel_ktiled(x_ref, w1_ref, b1_ref, w2_ref, b2_ref, o_ref, acc_ref):
    """Hidden (contraction) dim tiled over grid axis 1; f32 VMEM accumulator."""
    k = pl.program_id(1)

    @pl.when(k == 0)
    def _():
        acc_ref[...] = jnp.zeros_like(acc_ref)

    h = jnp.dot(x_ref[...], w1_ref[...], preferred_element_type=jnp.float32)
    h = jnp.maximum(h + b1_ref[...], 0.0)
    acc_ref[...] += jnp.dot(h.astype(x_ref.dtype), w2_ref[...],
                            preferred_element_type=jnp.float32)

    @pl.when(k == pl.num_programs(1) - 1)
    def _():
        o_ref[...] = (acc_ref[...] + b2_ref[...]).astype(o_ref.dtype)


# --------------------------------------------------------------------------
# Wrapper
# --------------------------------------------------------------------------
def dnn_mlp_forward(x, w1, b1, w2, b2, *, out_features=None, batch_tile=512,
                    hid_chunk=512, k_tile=512, force_k_tiled=False):
    """Fused DNN_MLP forward: ReLU(x @ W1 + b1) @ W2 + b2.

    x : [B, in_features]
    w1: [in_features(_padded), hidden(_padded)],  b1: [1, hidden(_padded)]
    w2: [hidden(_padded), out(_padded)],          b2: [1, out(_padded)]
    Weights may be pre-padded once with pad_params() (recommended in loops).
    out_features: true output width (defaults to w2.shape[1]).
    """
    B, in_f = x.shape
    if out_features is None:
        out_features = w2.shape[1]

    # Pads only when not already lane-aligned (no-op for pre-padded weights).
    w1, b1, w2, b2 = pad_params(w1, b1, w2, b2)
    in_p, hid_p = w1.shape
    out_p = w2.shape[1]

    dtype = x.dtype
    sub = _sublane(dtype)
    bpe_act = jnp.dtype(dtype).itemsize
    bpe_w = jnp.dtype(w1.dtype).itemsize

    cap = int(_vmem_capacity_bytes() * 0.85)  # headroom for compiler scratch

    # ---------------- batch tile ----------------
    tb = _round_up(min(batch_tile, _round_up(B, sub)), sub)
    # Aim for >= 4 grid steps when the batch allows, so x/out DMAs pipeline and
    # step 0's weight DMA is (partially) amortized.
    while tb > sub and pl.cdiv(B, tb) < 4 and tb // 2 >= max(sub, 64):
        tb = _round_up(tb // 2, sub)

    chunk = max(_LANE, _round_up(min(hid_chunk, hid_p), _LANE))
    # Buffered(1) plan: one copy of each weight/bias.
    w_resident = (in_p * hid_p + hid_p * out_p + hid_p + out_p) * bpe_w

    def _per_step_resident(tb_):
        return (2 * tb_ * in_p * bpe_act          # x tile, double buffered
                + 2 * tb_ * out_p * bpe_act       # out tile, double buffered
                + tb_ * chunk * (4 + bpe_act)     # f32 hidden slab + cast copy
                + tb_ * out_p * 4)                # f32 output accumulator

    need = w_resident + _per_step_resident(tb)
    # Prefer shrinking the batch tile (down to 64 rows) before giving up on the
    # fully-resident-weight plan.
    while need > cap and tb > max(sub, 64) and w_resident <= int(cap * 0.7):
        tb = max(_round_up(tb // 2, sub), sub)
        need = w_resident + _per_step_resident(tb)

    use_k_tiled = bool(force_k_tiled) or need > cap

    # ---------------- K-tiled sizing ----------------
    tk = hid_p
    if use_k_tiled:
        tk = max(_LANE, _round_up(min(k_tile, hid_p), _LANE))

        def _need_ktiled(tk_):
            return (2 * (in_p * tk_ + tk_ + tk_ * out_p) * bpe_w  # W1/b1/W2 tiles x2
                    + out_p * bpe_w                               # b2 (Buffered(1))
                    + 2 * tb * in_p * bpe_act
                    + 2 * tb * out_p * bpe_act
                    + tb * out_p * 4                              # acc scratch
                    + tb * tk_ * (4 + bpe_act))                   # hidden slab temps

        while _need_ktiled(tk) > cap and tk > _LANE:
            tk = max(_LANE, _round_up(tk // 2, _LANE))
        need = _need_ktiled(tk)
        # TODO(synk): if this still exceeds VMEM (huge in/out feature dims),
        # additionally tile in_p / out_p; not needed at realistic MLP sizes.

        hid_t = _round_up(hid_p, tk)
        if hid_t != hid_p:  # zero-padded hidden cols/rows contribute nothing
            w1 = _maybe_pad2d(w1, in_p, hid_t)
            b1 = _maybe_pad2d(b1, 1, hid_t)
            w2 = _maybe_pad2d(w2, hid_t, out_p)
            hid_p = hid_t

    b_pad = _round_up(B, tb)
    grid_b = b_pad // tb
    # Megacore sharding only pays when enough batch tiles amortize the
    # duplicated resident-weight DMA (v7x, 2 TCs); neutral on v5e/v6e.
    batch_sem = "parallel" if grid_b >= 4 else "arbitrary"

    xp = x
    if b_pad != B or in_p != in_f:
        xp = jnp.pad(x, ((0, b_pad - B), (0, in_p - in_f)))

    cost = pl.CostEstimate(
        flops=2 * B * (in_p * hid_p + hid_p * out_p),
        transcendentals=0,
        bytes_accessed=int(xp.size * bpe_act
                           + (w1.size + b1.size + w2.size + b2.size) * bpe_w
                           + b_pad * out_p * bpe_act),
    )

    def _resident_spec(shape, index_map, single_buffer):
        if single_buffer and _HAS_BUFFERED:
            return pl.BlockSpec(shape, index_map, pipeline_mode=pl.Buffered(1))
        return pl.BlockSpec(shape, index_map)

    def _build(single_buffer_weights: bool):
        if use_k_tiled:
            extra = 0 if single_buffer_weights else out_p * bpe_w
        else:
            extra = 0 if single_buffer_weights else w_resident
        vmem_limit = int(min(cap, max(need + extra + (4 << 20), 32 << 20)))

        if use_k_tiled:
            kernel = _mlp_kernel_ktiled
            grid = (grid_b, hid_p // tk)
            in_specs = [
                pl.BlockSpec((tb, in_p), lambda i, k: (i, 0)),     # streamed x
                pl.BlockSpec((in_p, tk), lambda i, k: (0, k)),     # W1 col tile
                pl.BlockSpec((1, tk), lambda i, k: (0, k)),        # b1 tile
                pl.BlockSpec((tk, out_p), lambda i, k: (k, 0)),    # W2 row tile
                _resident_spec((1, out_p), lambda i, k: (0, 0),
                               single_buffer_weights),             # resident b2
            ]
            out_specs = pl.BlockSpec((tb, out_p), lambda i, k: (i, 0))
            scratch_shapes = [pltpu.VMEM((tb, out_p), jnp.float32)]
            dims = (batch_sem, "arbitrary")
        else:
            kernel = functools.partial(_mlp_kernel_resident, hid_chunk=chunk)
            grid = (grid_b,)
            in_specs = [
                pl.BlockSpec((tb, in_p), lambda i: (i, 0)),        # streamed x
                _resident_spec((in_p, hid_p), lambda i: (0, 0),
                               single_buffer_weights),             # resident W1
                _resident_spec((1, hid_p), lambda i: (0, 0),
                               single_buffer_weights),             # resident b1
                _resident_spec((hid_p, out_p), lambda i: (0, 0),
                               single_buffer_weights),             # resident W2
                _resident_spec((1, out_p), lambda i: (0, 0),
                               single_buffer_weights),             # resident b2
            ]
            out_specs = pl.BlockSpec((tb, out_p), lambda i: (i, 0))
            scratch_shapes = []
            dims = (batch_sem,)

        return pl.pallas_call(
            kernel,
            out_shape=jax.ShapeDtypeStruct((b_pad, out_p), dtype),
            grid=grid,
            in_specs=in_specs,
            out_specs=out_specs,
            scratch_shapes=scratch_shapes,
            compiler_params=pltpu.CompilerParams(
                dimension_semantics=dims,
                vmem_limit_bytes=vmem_limit,
            ),
            cost_estimate=cost,
        )

    try:
        out_padded = _build(True)(xp, w1, b1, w2, b2)
    except Exception:
        # Fallback for runtimes that reject single-buffered (Buffered(1)) specs.
        out_padded = _build(False)(xp, w1, b1, w2, b2)

    if b_pad != B or out_p != out_features:
        return out_padded[:B, :out_features]
    return out_padded


def init_params(key, in_features, hidden_dim, out_features, dtype=jnp.float32):
    """Deterministic init mimicking nn.Linear's uniform(-1/sqrt(fan_in), ...)."""
    k1, k2, k3, k4 = jax.random.split(key, 4)
    lim1 = 1.0 / jnp.sqrt(in_features)
    lim2 = 1.0 / jnp.sqrt(hidden_dim)
    w1 = jax.random.uniform(k1, (in_features, hidden_dim), dtype, -lim1, lim1)
    b1 = jax.random.uniform(k2, (1, hidden_dim), dtype, -lim1, lim1)
    w2 = jax.random.uniform(k3, (hidden_dim, out_features), dtype, -lim2, lim2)
    b2 = jax.random.uniform(k4, (1, out_features), dtype, -lim2, lim2)
    return w1, b1, w2, b2


if __name__ == "__main__":
    key = jax.random.PRNGKey(0)
    kx, kp, kp2 = jax.random.split(key, 3)

    # Small shapes consistent with the module (Linear -> ReLU -> Linear).
    batch, in_features, hidden_dim, out_features = 8, 32, 64, 16
    x = jax.random.normal(kx, (batch, in_features), jnp.float32)
    w1, b1, w2, b2 = init_params(kp, in_features, hidden_dim, out_features)
    ref = jnp.maximum(x @ w1 + b1, 0.0) @ w2 + b2

    # Pad the parameters once (what an inference loop would do at load time).
    pw1, pb1, pw2, pb2 = pad_params(w1, b1, w2, b2)

    out = dnn_mlp_forward(x, pw1, pb1, pw2, pb2, out_features=out_features)
    jax.block_until_ready(out)
    assert out.shape == (batch, out_features)
    assert jnp.allclose(out, ref, atol=1e-5, rtol=1e-5)

    # Also exercise the K-tiled (hidden-contraction-over-grid) path with a
    # hidden dim large enough for >1 contraction step (320 -> 384 padded, tk=128).
    hid2 = 320
    w1b, b1b, w2b, b2b = init_params(kp2, in_features, hid2, out_features)
    ref2 = jnp.maximum(x @ w1b + b1b, 0.0) @ w2b + b2b
    out2 = dnn_mlp_forward(x, w1b, b1b, w2b, b2b,
                           force_k_tiled=True, k_tile=128)
    jax.block_until_ready(out2)
    assert out2.shape == (batch, out_features)
    assert jnp.allclose(out2, ref2, atol=1e-4, rtol=1e-4)

    print("KERNEL_OK")
</pallas_src>

<mosaic_0001>
module attributes {stable_mosaic.version = 11 : i64} {
  func.func @_mlp_kernel_resident(%arg0: i32, %arg1: memref<8x128xf32, #tpu.memory_space<vmem>>, %arg2: memref<128x128xf32, #tpu.memory_space<vmem>>, %arg3: memref<1x128xf32, #tpu.memory_space<vmem>>, %arg4: memref<128x128xf32, #tpu.memory_space<vmem>>, %arg5: memref<1x128xf32, #tpu.memory_space<vmem>>, %arg6: memref<8x128xf32, #tpu.memory_space<vmem>>) attributes {dimension_semantics = [#tpu.dimension_semantics<arbitrary>], iteration_bounds = array<i64: 1>, scalar_prefetch = 0 : i64, scratch_operands = 0 : i64, tpu.core_type = #tpu.core_type<tc>, window_params = [{transform_indices = @transform_0, window_bounds = array<i64: 8, 128>}, {pipeline_mode = #tpu.pipeline_mode<synchronous>, transform_indices = @transform_1, window_bounds = array<i64: 128, 128>}, {pipeline_mode = #tpu.pipeline_mode<synchronous>, transform_indices = @transform_2, window_bounds = array<i64: 1, 128>}, {pipeline_mode = #tpu.pipeline_mode<synchronous>, transform_indices = @transform_3, window_bounds = array<i64: 128, 128>}, {pipeline_mode = #tpu.pipeline_mode<synchronous>, transform_indices = @transform_4, window_bounds = array<i64: 1, 128>}, {transform_indices = @transform_5, window_bounds = array<i64: 8, 128>}]} {
    %c0 = arith.constant 0 : index
    %c0_0 = arith.constant 0 : index
    %0 = vector.load %arg1[%c0, %c0_0] : memref<8x128xf32, #tpu.memory_space<vmem>>, vector<8x128xf32>
    %cst = arith.constant 0.000000e+00 : f32
    %1 = vector.broadcast %cst : f32 to vector<8x128xf32>
    %c0_1 = arith.constant 0 : index
    %c0_2 = arith.constant 0 : index
    %2 = vector.load %arg2[%c0_1, %c0_2] : memref<128x128xf32, #tpu.memory_space<vmem>>, vector<128x128xf32>
    %cst_3 = arith.constant dense<0.000000e+00> : vector<8x128xf32>
    %3 = tpu.matmul %0, %2, %cst_3 {dimension_numbers = #tpu.dot_dimension_numbers<[1], [0], [0], [1], [0, 0, 1, 1], [], []>} : vector<8x128xf32>, vector<128x128xf32>, vector<8x128xf32> -> vector<8x128xf32>
    %c0_4 = arith.constant 0 : index
    %c0_5 = arith.constant 0 : index
    %4 = vector.load %arg3[%c0_4, %c0_5] : memref<1x128xf32, #tpu.memory_space<vmem>>, vector<1x128xf32>
    %5 = vector.broadcast %4 : vector<1x128xf32> to vector<8x128xf32>
    %6 = arith.addf %3, %5 : vector<8x128xf32>
    %cst_6 = arith.constant 0.000000e+00 : f32
    %7 = vector.broadcast %cst_6 : f32 to vector<8x128xf32>
    %8 = arith.maximumf %6, %7 : vector<8x128xf32>
    %c0_7 = arith.constant 0 : index
    %c0_8 = arith.constant 0 : index
    %9 = vector.load %arg4[%c0_7, %c0_8] : memref<128x128xf32, #tpu.memory_space<vmem>>, vector<128x128xf32>
    %cst_9 = arith.constant dense<0.000000e+00> : vector<8x128xf32>
    %10 = tpu.matmul %8, %9, %cst_9 {dimension_numbers = #tpu.dot_dimension_numbers<[1], [0], [0], [1], [0, 0, 1, 1], [], []>} : vector<8x128xf32>, vector<128x128xf32>, vector<8x128xf32> -> vector<8x128xf32>
    %11 = arith.addf %1, %10 : vector<8x128xf32>
    %c0_10 = arith.constant 0 : index
    %c0_11 = arith.constant 0 : index
    %12 = vector.load %arg5[%c0_10, %c0_11] : memref<1x128xf32, #tpu.memory_space<vmem>>, vector<1x128xf32>
    %13 = vector.broadcast %12 : vector<1x128xf32> to vector<8x128xf32>
    %14 = arith.addf %11, %13 : vector<8x128xf32>
    %c0_12 = arith.constant 0 : index
    %c0_13 = arith.constant 0 : index
    %15 = vector.load %arg6[%c0_12, %c0_13] : memref<8x128xf32, #tpu.memory_space<vmem>>, vector<8x128xf32>
    tpu.vector_store %arg6[%c0_12, %c0_13], %14 {strides = array<i32>} : memref<8x128xf32, #tpu.memory_space<vmem>>, vector<8x128xf32>,
    return
  }
  func.func @transform_0(%arg0: i32) -> (i32, i32) {
    %c0_i32 = arith.constant 0 : i32
    %c0_i32_0 = arith.constant 0 : i32
    return %arg0, %c0_i32 : i32, i32
  }
  func.func @transform_1(%arg0: i32) -> (i32, i32) {
    %c0_i32 = arith.constant 0 : i32
    %c0_i32_0 = arith.constant 0 : i32
    %c0_i32_1 = arith.constant 0 : i32
    return %c0_i32, %c0_i32_0 : i32, i32
  }
  func.func @transform_2(%arg0: i32) -> (i32, i32) {
    %c0_i32 = arith.constant 0 : i32
    %c0_i32_0 = arith.constant 0 : i32
    %c0_i32_1 = arith.constant 0 : i32
    return %c0_i32, %c0_i32_0 : i32, i32
  }
  func.func @transform_3(%arg0: i32) -> (i32, i32) {
    %c0_i32 = arith.constant 0 : i32
    %c0_i32_0 = arith.constant 0 : i32
    %c0_i32_1 = arith.constant 0 : i32
    return %c0_i32, %c0_i32_0 : i32, i32
  }
  func.func @transform_4(%arg0: i32) -> (i32, i32) {
    %c0_i32 = arith.constant 0 : i32
    %c0_i32_0 = arith.constant 0 : i32
    %c0_i32_1 = arith.constant 0 : i32
    return %c0_i32, %c0_i32_0 : i32, i32
  }
  func.func @transform_5(%arg0: i32) -> (i32, i32) {
    %c0_i32 = arith.constant 0 : i32
    %c0_i32_0 = arith.constant 0 : i32
    return %arg0, %c0_i32 : i32, i32
  }
}

module attributes {stable_mosaic.version = 11 : i64} {
  func.func @_mlp_kernel_resident(%arg0: i32, %arg1: memref<8x128xf32, #tpu.memory_space<vmem>>, %arg2: memref<128x128xf32, #tpu.memory_space<vmem>>, %arg3: memref<1x128xf32, #tpu.memory_space<vmem>>, %arg4: memref<128x128xf32, #tpu.memory_space<vmem>>, %arg5: memref<1x128xf32, #tpu.memory_space<vmem>>, %arg6: memref<8x128xf32, #tpu.memory_space<vmem>>) attributes {dimension_semantics = [#tpu.dimension_semantics<arbitrary>], iteration_bounds = array<i64: 1>, scalar_prefetch = 0 : i64, scratch_operands = 0 : i64, tpu.core_type = #tpu.core_type<tc>, window_params = [{transform_indices = @transform_0, window_bounds = array<i64: 8, 128>}, {pipeline_mode = #tpu.pipeline_mode<synchronous>, transform_indices = @transform_1, window_bounds = array<i64: 128, 128>}, {pipeline_mode = #tpu.pipeline_mode<synchronous>, transform_indices = @transform_2, window_bounds = array<i64: 1, 128>}, {pipeline_mode = #tpu.pipeline_mode<synchronous>, transform_indices = @transform_3, window_bounds = array<i64: 128, 128>}, {pipeline_mode = #tpu.pipeline_mode<synchronous>, transform_indices = @transform_4, window_bounds = array<i64: 1, 128>}, {transform_indices = @transform_5, window_bounds = array<i64: 8, 128>}]} {
    %c0 = arith.constant 0 : index
    %c0_0 = arith.constant 0 : index
    %0 = vector.load %arg1[%c0, %c0_0] : memref<8x128xf32, #tpu.memory_space<vmem>>, vector<8x128xf32>
    %cst = arith.constant 0.000000e+00 : f32
    %1 = vector.broadcast %cst : f32 to vector<8x128xf32>
    %c0_1 = arith.constant 0 : index
    %c0_2 = arith.constant 0 : index
    %2 = vector.load %arg2[%c0_1, %c0_2] : memref<128x128xf32, #tpu.memory_space<vmem>>, vector<128x128xf32>
    %cst_3 = arith.constant dense<0.000000e+00> : vector<8x128xf32>
    %3 = tpu.matmul %0, %2, %cst_3 {dimension_numbers = #tpu.dot_dimension_numbers<[1], [0], [0], [1], [0, 0, 1, 1], [], []>} : vector<8x128xf32>, vector<128x128xf32>, vector<8x128xf32> -> vector<8x128xf32>
    %c0_4 = arith.constant 0 : index
    %c0_5 = arith.constant 0 : index
    %4 = vector.load %arg3[%c0_4, %c0_5] : memref<1x128xf32, #tpu.memory_space<vmem>>, vector<1x128xf32>
    %5 = vector.broadcast %4 : vector<1x128xf32> to vector<8x128xf32>
    %6 = arith.addf %3, %5 : vector<8x128xf32>
    %cst_6 = arith.constant 0.000000e+00 : f32
    %7 = vector.broadcast %cst_6 : f32 to vector<8x128xf32>
    %8 = arith.maximumf %6, %7 : vector<8x128xf32>
    %c0_7 = arith.constant 0 : index
    %c0_8 = arith.constant 0 : index
    %9 = vector.load %arg4[%c0_7, %c0_8] : memref<128x128xf32, #tpu.memory_space<vmem>>, vector<128x128xf32>
    %cst_9 = arith.constant dense<0.000000e+00> : vector<8x128xf32>
    %10 = tpu.matmul %8, %9, %cst_9 {dimension_numbers = #tpu.dot_dimension_numbers<[1], [0], [0], [1], [0, 0, 1, 1], [], []>} : vector<8x128xf32>, vector<128x128xf32>, vector<8x128xf32> -> vector<8x128xf32>
    %11 = arith.addf %1, %10 : vector<8x128xf32>
    %c0_10 = arith.constant 0 : index
    %c0_11 = arith.constant 0 : index
    %12 = vector.load %arg5[%c0_10, %c0_11] : memref<1x128xf32, #tpu.memory_space<vmem>>, vector<1x128xf32>
    %13 = vector.broadcast %12 : vector<1x128xf32> to vector<8x128xf32>
    %14 = arith.addf %11, %13 : vector<8x128xf32>
    %c0_12 = arith.constant 0 : index
    %c0_13 = arith.constant 0 : index
    %15 = vector.load %arg6[%c0_12, %c0_13] : memref<8x128xf32, #tpu.memory_space<vmem>>, vector<8x128xf32>
    tpu.vector_store %arg6[%c0_12, %c0_13], %14 {strides = array<i32>} : memref<8x128xf32, #tpu.memory_space<vmem>>, vector<8x128xf32>,
    return
  }
  func.func @transform_0(%arg0: i32) -> (i32, i32) {
    %c0_i32 = arith.constant 0 : i32
    %c0_i32_0 = arith.constant 0 : i32
    return %arg0, %c0_i32 : i32, i32
  }
  func.func @transform_1(%arg0: i32) -> (i32, i32) {
    %c0_i32 = arith.constant 0 : i32
    %c0_i32_0 = arith.constant 0 : i32
    %c0_i32_1 = arith.constant 0 : i32
    return %c0_i32, %c0_i32_0 : i32, i32
  }
  func.func @transform_2(%arg0: i32) -> (i32, i32) {
    %c0_i32 = arith.constant 0 : i32
    %c0_i32_0 = arith.constant 0 : i32
    %c0_i32_1 = arith.constant 0 : i32
    return %c0_i32, %c0_i32_0 : i32, i32
  }
  func.func @transform_3(%arg0: i32) -> (i32, i32) {
    %c0_i32 = arith.constant 0 : i32
    %c0_i32_0 = arith.constant 0 : i32
    %c0_i32_1 = arith.constant 0 : i32
    return %c0_i32, %c0_i32_0 : i32, i32
  }
  func.func @transform_4(%arg0: i32) -> (i32, i32) {
    %c0_i32 = arith.constant 0 : i32
    %c0_i32_0 = arith.constant 0 : i32
    %c0_i32_1 = arith.constant 0 : i32
    return %c0_i32, %c0_i32_0 : i32, i32
  }
  func.func @transform_5(%arg0: i32) -> (i32, i32) {
    %c0_i32 = arith.constant 0 : i32
    %c0_i32_0 = arith.constant 0 : i32
    return %arg0, %c0_i32 : i32, i32
  }
}

</mosaic_0001>

<bundles_post_ra>
// kernel: tpu_custom_call.1
= control target key start
LH: loop header
LB: loop body
LE: loop exit
PB: predicated region body
PF: predicated region fallthrough
CT: control target
= control target key end

     0   :  { %10 = vsyncpa [#allocation3], 0  ;;  %s637_s0 = inlined_call_operand.hbm [shape: f32[8,128], index: 0, kind: input, shape index: {}]   ;;  %s638_s1 = inlined_call_operand.hbm [shape: f32[128,128], index: 1, kind: input, shape index: {}]   ;;  %s639_s2 = inlined_call_operand.vmem [shape: f32[1,128], index: 2, kind: input, shape index: {}]   ;;  %s640_s3 = inlined_call_operand.hbm [shape: f32[128,128], index: 3, kind: input, shape index: {}]   ;;  %s641_s4 = inlined_call_operand.vmem [shape: f32[1,128], index: 4, kind: input, shape index: {}]   ;;  %s642_s5 = inlined_call_operand.hbm [shape: f32[8,128], index: 5, kind: output, shape index: {}]  }
   0x1   :  { %11 = vsyncpa [#allocation6], 0 }
   0x2   :  { %12 = vsyncpa [#allocation4], 0  ;;  %s522_s18 = smov [#allocation5]   ;;  %s428_s22 = scalar_lea.hbm %s638_s1, 2048 }
   0x3   :  { %s28_s19 = sshll.u32 %s522_s18, 4  ;;  %p429_p0 = scmp.ne.s32.totalorder %s638_s1, %s428_s22  ;;  %s29_s19 = int_to_ptr.vmem [resolvable:$true] %s28_s19 }
   0x4   :  { %p432_p1 = scmp.lt.u32.totalorder %s428_s22, %s638_s1 }
   0x6   :  { %p434_p2 = pnand %p432_p1, %p429_p0 }
   0x8   :  { %437 = shalt.err (!%p434_p2)
}
   0x9   :  { %s438_s27 = scalar_lea.vmem %s29_s19, 2048  ;;  %p443_p4 = scmp.lt.s32.totalorder %s29_s19, %s29_s19 }
   0xa   :  { %p439_p3 = scmp.ne.s32.totalorder %s29_s19, %s438_s27  ;;  %p444_p5 = scmp.lt.s32.totalorder %s438_s27, %s438_s27 }
   0xc   :  { %p445_p6 = por %p444_p5, %p443_p4 }
   0xe   :  { %p446_p7 = pnand %p445_p6, %p439_p3 }
  0x10   :  { %449 = shalt.err (!%p446_p7)
}
  0x11   :  { %s523_s28 = smov 128   ;;  %s524_s29 = smov 8  }
  0x12   :  { %34 = dma.hbm_to_vmem [thread:$0]  %s638_s1, 2048, %s29_s19, [#allocation6], %s523_s28, %s523_s28, %s524_s29  }
  0x13   :  { %s525_s7 = smov [#allocation2]   ;;  %s526_s9 = smov [#allocation7]  }
  0x14   :  { %s19_s8 = sshll.u32 %s525_s7, 4  ;;  %s42_s10 = sshll.u32 %s526_s9, 4  ;;  %s20_s8 = int_to_ptr.vmem [resolvable:$true] %s19_s8  ;;  %s43_s10 = int_to_ptr.vmem [resolvable:$true] %s42_s10 }
  0x15   :  { %s450_s13 = scalar_lea.hbm %s637_s0, 128 }
  0x16   :  { %p451_p8 = scmp.ne.s32.totalorder %s637_s0, %s450_s13  ;;  %p454_p9 = scmp.lt.u32.totalorder %s450_s13, %s637_s0 }
  0x18   :  { %p456_p10 = pnand %p454_p9, %p451_p8 }
  0x1a   :  { %459 = shalt.err (!%p456_p10)
}
  0x1b   :  { %s460_s1 = scalar_lea.vmem %s20_s8, 128  ;;  %p465_p12 = scmp.lt.s32.totalorder %s20_s8, %s20_s8 }
  0x1c   :  { %p461_p11 = scmp.ne.s32.totalorder %s20_s8, %s460_s1  ;;  %p466_p13 = scmp.lt.s32.totalorder %s460_s1, %s460_s1 }
  0x1e   :  { %p467_p0 = por %p466_p13, %p465_p12 }
  0x20   :  { %p468_p1 = pnand %p467_p0, %p461_p11 }
  0x22   :  { %471 = shalt.err (!%p468_p1)
}
  0x23   :  { %22 = dma.hbm_to_vmem [thread:$0]  %s637_s0, 128, %s20_s8, [#allocation3]  }
  0x24   :  { %s472_s22 = scalar_lea.hbm %s640_s3, 2048 }
  0x25   :  { %p473_p2 = scmp.ne.s32.totalorder %s640_s3, %s472_s22  ;;  %p476_p3 = scmp.lt.u32.totalorder %s472_s22, %s640_s3 }
  0x27   :  { %p478_p4 = pnand %p476_p3, %p473_p2 }
  0x29   :  { %481 = shalt.err (!%p478_p4)
}
  0x2a   :  { %s482_s27 = scalar_lea.vmem %s43_s10, 2048  ;;  %p487_p6 = scmp.lt.s32.totalorder %s43_s10, %s43_s10 }
  0x2b   :  { %p483_p5 = scmp.ne.s32.totalorder %s43_s10, %s482_s27  ;;  %p488_p7 = scmp.lt.s32.totalorder %s482_s27, %s482_s27 }
  0x2d   :  { %p489_p8 = por %p488_p7, %p487_p6 }
  0x2f   :  { %p490_p9 = pnand %p489_p8, %p483_p5 }
  0x31   :  { %493 = shalt.err (!%p490_p9)
}
  0x32   :  { %48 = dma.hbm_to_vmem [thread:$0]  %s640_s3, 2048, %s43_s10, [#allocation6], %s523_s28, %s523_s28, %s524_s29  }
  0x33   :  { %516 = dma.done.wait [#allocation3], 128  }
  0x34   :  { %517 = vsyncadd [#allocation3], 4294967168 }
  0x35   :  { %518 = dma.done.wait [#allocation6], 4096  }
  0x36   :  { %519 = vsyncadd [#allocation6], 4294963200  ;;  %v527_v0 = vmov 0.0|0.0   ;;  %vm528_vm0 = vmmov 0   ;;  %v529_v1 = vmov 0.0   ;;  %v61_v2 = vld [vmem:[#allocation5] sm:$0xff] }
  0x37   :  { %371 = vmatprep.subr.bf16.mxu0 %v527_v0  ;;  %333 = vmatprep.mubr.msk.f32.mxu0 %vm528_vm0, %v529_v1  ;;  %v62_v3 = vld [vmem:[#allocation5 + $0x8] sm:$0xff]  ;;  %v63_v4 = vld [vmem:[#allocation5 + $0x10] sm:$0xff]  ;;  %v64_v6 = vld [vmem:[#allocation5 + $0x18] sm:$0xff]  ;;  %s530_s7 = smov [#allocation8]  }
  0x38   :  { %395 = vmatprep.subr.bf16.mxu1 %v527_v0  ;;  %368 = vmatprep.mubr.msk.f32.mxu1 %vm528_vm0, %v529_v1  ;;  %v372_v5 = vpack.c.bf16 %v62_v3, %v61_v2  ;;  %v375_v7 = vpack.c.bf16 %v64_v6, %v63_v4  ;;  %v65_v8 = vld [vmem:[#allocation5 + $0x20] sm:$0xff]  ;;  %v66_v9 = vld [vmem:[#allocation5 + $0x28] sm:$0xff]  ;;  %v157_v12 = vld [vmem:[#allocation7 + $0x10] sm:$0xff]  ;;  %s255_s8 = sshll.u32 %s530_s7, 4  ;;  %s256_s8 = int_to_ptr.vmem [resolvable:$true] %s255_s8 }
  0x39   :  { %v155_v10 = vld [vmem:[#allocation7] sm:$0xff]  ;;  %v156_v11 = vld [vmem:[#allocation7 + $0x8] sm:$0xff]  ;;  %v158_v13 = vld [vmem:[#allocation7 + $0x18] sm:$0xff]  ;;  %v378_v14 = vpack.c.bf16 %v66_v9, %v65_v8  ;;  %s494_s9 = scalar_lea.vmem %s256_s8, 128  ;;  %p499_p11 = scmp.lt.s32.totalorder %s256_s8, %s256_s8 }
  0x3a   :  { %373 = vmatpush3.bf16.msra.mxu0 %v372_v5  ;;  %v396_v15 = vpack.c.bf16 %v156_v11, %v155_v10  ;;  %v67_v16 = vld [vmem:[#allocation5 + $0x30] sm:$0xff]  ;;  %v68_v17 = vld [vmem:[#allocation5 + $0x38] sm:$0xff]  ;;  %v399_v18 = vpack.c.bf16 %v158_v13, %v157_v12  ;;  %v159_v19 = vld [vmem:[#allocation7 + $0x20] sm:$0xff]  ;;  %p495_p10 = scmp.ne.s32.totalorder %s256_s8, %s494_s9  ;;  %p500_p12 = scmp.lt.s32.totalorder %s494_s9, %s494_s9 }
  0x3b   :  { %374 = vmatprep.subr.bf16.mxu0 %v527_v0  ;;  %v160_v20 = vld [vmem:[#allocation7 + $0x28] sm:$0xff]  ;;  %v381_v21 = vpack.c.bf16 %v68_v17, %v67_v16  ;;  %v69_v22 = vld [vmem:[#allocation5 + $0x40] sm:$0xff]  ;;  %v161_v25 = vld [vmem:[#allocation7 + $0x30] sm:$0xff] }
  0x3c   :  { %397 = vmatpush3.bf16.msra.mxu1 %v396_v15  ;;  %v70_v23 = vld [vmem:[#allocation5 + $0x48] sm:$0xff]  ;;  %v402_v24 = vpack.c.bf16 %v160_v20, %v159_v19  ;;  %v162_v26 = vld [vmem:[#allocation7 + $0x38] sm:$0xff]  ;;  %v71_v28 = vld [vmem:[#allocation5 + $0x50] sm:$0xff]  ;;  %p501_p13 = por %p500_p12, %p499_p11 }
  0x3d   :  { %398 = vmatprep.subr.bf16.mxu1 %v527_v0  ;;  %v384_v27 = vpack.c.bf16 %v70_v23, %v69_v22  ;;  %v72_v29 = vld [vmem:[#allocation5 + $0x58] sm:$0xff]  ;;  %v405_v30 = vpack.c.bf16 %v162_v26, %v161_v25  ;;  %v163_v31 = vld [vmem:[#allocation7 + $0x40] sm:$0xff]  ;;  %v164_v32 = vld [vmem:[#allocation7 + $0x48] sm:$0xff] }
  0x3e   :  { %376 = vmatpush3.bf16.msra.mxu0 %v375_v7  ;;  %v387_v33 = vpack.c.bf16 %v72_v29, %v71_v28  ;;  %v73_v34 = vld [vmem:[#allocation5 + $0x60] sm:$0xff]  ;;  %v74_v35 = vld [vmem:[#allocation5 + $0x68] sm:$0xff]  ;;  %v408_v36 = vpack.c.bf16 %v164_v32, %v163_v31  ;;  %v165_v37 = vld [vmem:[#allocation7 + $0x50] sm:$0xff]  ;;  %p502_p0 = pnand %p501_p13, %p495_p10 }
  0x3f   :  { %377 = vmatprep.subr.bf16.mxu0 %v527_v0  ;;  %v166_v38 = vld [vmem:[#allocation7 + $0x58] sm:$0xff]  ;;  %v390_v39 = vpack.c.bf16 %v74_v35, %v73_v34  ;;  %v75_v40 = vld [vmem:[#allocation5 + $0x70] sm:$0xff]  ;;  %v167_v43 = vld [vmem:[#allocation7 + $0x60] sm:$0xff] }
  0x40   :  { %400 = vmatpush3.bf16.msra.mxu1 %v399_v18  ;;  %v76_v41 = vld [vmem:[#allocation5 + $0x78] sm:$0xff]  ;;  %v411_v42 = vpack.c.bf16 %v166_v38, %v165_v37  ;;  %v168_v44 = vld [vmem:[#allocation7 + $0x68] sm:$0xff]  ;;  %v169_v48 = vld [vmem:[#allocation7 + $0x70] sm:$0xff] }
  0x41   :  { %401 = vmatprep.subr.bf16.mxu1 %v527_v0  ;;  %v393_v45 = vpack.c.bf16 %v76_v41, %v75_v40  ;;  %v414_v46 = vpack.c.bf16 %v168_v44, %v167_v43  ;;  %v60_v47 = vld [vmem:[#allocation2] sm:$0xff] }
  0x42   :  { %379 = vmatpush3.bf16.msra.mxu0 %v378_v14  ;;  %v170_v49 = vld [vmem:[#allocation7 + $0x78] sm:$0xff] }
  0x43   :  { %380 = vmatprep.subr.bf16.mxu0 %v527_v0  ;;  %v417_v50 = vpack.c.bf16 %v170_v49, %v169_v48  ;;  %v265_v51 = vld [vmem:[%s639_s2] ss:$0 sm:$0xff] }
  0x44   :  { %403 = vmatpush3.bf16.msra.mxu1 %v402_v24  ;;  %v266_v56 = vld [vmem:[%s641_s4] ss:$0 sm:$0xff] }
  0x45   :  { %404 = vmatprep.subr.bf16.mxu1 %v527_v0 }
  0x46   :  { %382 = vmatpush3.bf16.msra.mxu0 %v381_v21 }
  0x47   :  { %383 = vmatprep.subr.bf16.mxu0 %v527_v0 }
  0x48   :  { %406 = vmatpush3.bf16.msra.mxu1 %v405_v30 }
  0x49   :  { %407 = vmatprep.subr.bf16.mxu1 %v527_v0 }
  0x4a   :  { %385 = vmatpush3.bf16.msra.mxu0 %v384_v27 }
  0x4b   :  { %386 = vmatprep.subr.bf16.mxu0 %v527_v0 }
  0x4c   :  { %409 = vmatpush3.bf16.msra.mxu1 %v408_v36 }
  0x4d   :  { %410 = vmatprep.subr.bf16.mxu1 %v527_v0 }
  0x4e   :  { %388 = vmatpush3.bf16.msra.mxu0 %v387_v33 }
  0x4f   :  { %389 = vmatprep.subr.bf16.mxu0 %v527_v0 }
  0x50   :  { %412 = vmatpush3.bf16.msra.mxu1 %v411_v42 }
  0x51   :  { %413 = vmatprep.subr.bf16.mxu1 %v527_v0 }
  0x52   :  { %391 = vmatpush3.bf16.msra.mxu0 %v390_v39 }
  0x53   :  { %392 = vmatprep.subr.bf16.mxu0 %v527_v0 }
  0x54   :  { %415 = vmatpush3.bf16.msra.mxu1 %v414_v46 }
  0x55   :  { %416 = vmatprep.subr.bf16.mxu1 %v527_v0 }
  0x56   :  { %394 = vmatpush3.bf16.msra.mxu0 %v393_v45 }
  0x58   :  { %418 = vmatpush3.bf16.msra.mxu1 %v417_v50 }
  0x59   :  { %334 = vmatmul.mubr.f32.vlgmr.msra.gmra.mrb[0].mxu0 %v60_v47 }
 0x12c   :  { %v150_v52 = vpop.f32.mrb[0].mxu0 }
 0x12d   :  { %v151_v53 = vadd.f32 %v265_v51, %v150_v52  ;;  %v335_v54 = vpop.f32.mrb[1].mxu0 }
 0x12f   :  { %v154_v55 = vmax.f32 %v151_v53, 0.0 }
 0x131   :  { %369 = vmatmul.mubr.f32.vlgmr.msra.gmra.mrb[0].mxu1 %v154_v55 }
 0x204   :  { %v244_v57 = vpop.f32.mrb[0].mxu1 }
 0x205   :  { %v245_v58 = vadd.f32 %v266_v56, %v244_v57  ;;  %v370_v59 = vpop.f32.mrb[1].mxu1 }
 0x207   :  { %248 = vst [vmem:[#allocation8] sm:$0xff] %v245_v58 }
 0x208   :  { %505 = shalt.err (!%p502_p0)
}
 0x209   :  { %s506_s11 = scalar_lea.hbm %s642_s5, 128 }
 0x20a   :  { %p507_p1 = scmp.ne.s32.totalorder %s642_s5, %s506_s11  ;;  %p510_p2 = scmp.lt.u32.totalorder %s506_s11, %s642_s5 }
 0x20c   :  { %p512_p3 = pnand %p510_p2, %p507_p1 }
 0x20e   :  { %515 = shalt.err (!%p512_p3)
}
 0x20f   :  { %258 = dma.vmem_to_hbm [thread:$0]  %s256_s8, 128, %s642_s5, [#allocation4]  }
 0x210   :  { %520 = dma.done.wait [#allocation4], 128  }
 0x211   :  { %521 = vsyncadd [#allocation4], 4294967168 }
 0x212   :  { %262 = vsyncpa [#allocation3], 1 }
 0x213   :  { %263 = vsyncpa [#allocation6], 1 }
 0x214   :  { %264 = vsyncpa [#allocation4], 1 }

// kernel: tpu_custom_call.1
= control target key start
LH: loop header
LB: loop body
LE: loop exit
PB: predicated region body
PF: predicated region fallthrough
CT: control target
= control target key end

     0   :  { %10 = vsyncpa [#allocation3], 0  ;;  %s637_s0 = inlined_call_operand.hbm [shape: f32[8,128], index: 0, kind: input, shape index: {}]   ;;  %s638_s1 = inlined_call_operand.hbm [shape: f32[128,128], index: 1, kind: input, shape index: {}]   ;;  %s639_s2 = inlined_call_operand.vmem [shape: f32[1,128], index: 2, kind: input, shape index: {}]   ;;  %s640_s3 = inlined_call_operand.hbm [shape: f32[128,128], index: 3, kind: input, shape index: {}]   ;;  %s641_s4 = inlined_call_operand.vmem [shape: f32[1,128], index: 4, kind: input, shape index: {}]   ;;  %s642_s5 = inlined_call_operand.hbm [shape: f32[8,128], index: 5, kind: output, shape index: {}]  }
   0x1   :  { %11 = vsyncpa [#allocation6], 0 }
   0x2   :  { %12 = vsyncpa [#allocation4], 0  ;;  %s522_s18 = smov [#allocation5]   ;;  %s428_s22 = scalar_lea.hbm %s638_s1, 2048 }
   0x3   :  { %s28_s19 = sshll.u32 %s522_s18, 4  ;;  %p429_p0 = scmp.ne.s32.totalorder %s638_s1, %s428_s22  ;;  %s29_s19 = int_to_ptr.vmem [resolvable:$true] %s28_s19 }
   0x4   :  { %p432_p1 = scmp.lt.u32.totalorder %s428_s22, %s638_s1 }
   0x6   :  { %p434_p2 = pnand %p432_p1, %p429_p0 }
   0x8   :  { %437 = shalt.err (!%p434_p2)
}
   0x9   :  { %s438_s27 = scalar_lea.vmem %s29_s19, 2048  ;;  %p443_p4 = scmp.lt.s32.totalorder %s29_s19, %s29_s19 }
   0xa   :  { %p439_p3 = scmp.ne.s32.totalorder %s29_s19, %s438_s27  ;;  %p444_p5 = scmp.lt.s32.totalorder %s438_s27, %s438_s27 }
   0xc   :  { %p445_p6 = por %p444_p5, %p443_p4 }
   0xe   :  { %p446_p7 = pnand %p445_p6, %p439_p3 }
  0x10   :  { %449 = shalt.err (!%p446_p7)
}
  0x11   :  { %s523_s28 = smov 128   ;;  %s524_s29 = smov 8  }
  0x12   :  { %34 = dma.hbm_to_vmem [thread:$0]  %s638_s1, 2048, %s29_s19, [#allocation6], %s523_s28, %s523_s28, %s524_s29  }
  0x13   :  { %s525_s7 = smov [#allocation2]   ;;  %s526_s9 = smov [#allocation7]  }
  0x14   :  { %s19_s8 = sshll.u32 %s525_s7, 4  ;;  %s42_s10 = sshll.u32 %s526_s9, 4  ;;  %s20_s8 = int_to_ptr.vmem [resolvable:$true] %s19_s8  ;;  %s43_s10 = int_to_ptr.vmem [resolvable:$true] %s42_s10 }
  0x15   :  { %s450_s13 = scalar_lea.hbm %s637_s0, 128 }
  0x16   :  { %p451_p8 = scmp.ne.s32.totalorder %s637_s0, %s450_s13  ;;  %p454_p9 = scmp.lt.u32.totalorder %s450_s13, %s637_s0 }
  0x18   :  { %p456_p10 = pnand %p454_p9, %p451_p8 }
  0x1a   :  { %459 = shalt.err (!%p456_p10)
}
  0x1b   :  { %s460_s1 = scalar_lea.vmem %s20_s8, 128  ;;  %p465_p12 = scmp.lt.s32.totalorder %s20_s8, %s20_s8 }
  0x1c   :  { %p461_p11 = scmp.ne.s32.totalorder %s20_s8, %s460_s1  ;;  %p466_p13 = scmp.lt.s32.totalorder %s460_s1, %s460_s1 }
  0x1e   :  { %p467_p0 = por %p466_p13, %p465_p12 }
  0x20   :  { %p468_p1 = pnand %p467_p0, %p461_p11 }
  0x22   :  { %471 = shalt.err (!%p468_p1)
}
  0x23   :  { %22 = dma.hbm_to_vmem [thread:$0]  %s637_s0, 128, %s20_s8, [#allocation3]  }
  0x24   :  { %s472_s22 = scalar_lea.hbm %s640_s3, 2048 }
  0x25   :  { %p473_p2 = scmp.ne.s32.totalorder %s640_s3, %s472_s22  ;;  %p476_p3 = scmp.lt.u32.totalorder %s472_s22, %s640_s3 }
  0x27   :  { %p478_p4 = pnand %p476_p3, %p473_p2 }
  0x29   :  { %481 = shalt.err (!%p478_p4)
}
  0x2a   :  { %s482_s27 = scalar_lea.vmem %s43_s10, 2048  ;;  %p487_p6 = scmp.lt.s32.totalorder %s43_s10, %s43_s10 }
  0x2b   :  { %p483_p5 = scmp.ne.s32.totalorder %s43_s10, %s482_s27  ;;  %p488_p7 = scmp.lt.s32.totalorder %s482_s27, %s482_s27 }
  0x2d   :  { %p489_p8 = por %p488_p7, %p487_p6 }
  0x2f   :  { %p490_p9 = pnand %p489_p8, %p483_p5 }
  0x31   :  { %493 = shalt.err (!%p490_p9)
}
  0x32   :  { %48 = dma.hbm_to_vmem [thread:$0]  %s640_s3, 2048, %s43_s10, [#allocation6], %s523_s28, %s523_s28, %s524_s29  }
  0x33   :  { %516 = dma.done.wait [#allocation3], 128  }
  0x34   :  { %517 = vsyncadd [#allocation3], 4294967168 }
  0x35   :  { %518 = dma.done.wait [#allocation6], 4096  }
  0x36   :  { %519 = vsyncadd [#allocation6], 4294963200  ;;  %v527_v0 = vmov 0.0|0.0   ;;  %vm528_vm0 = vmmov 0   ;;  %v529_v1 = vmov 0.0   ;;  %v61_v2 = vld [vmem:[#allocation5] sm:$0xff] }
  0x37   :  { %371 = vmatprep.subr.bf16.mxu0 %v527_v0  ;;  %333 = vmatprep.mubr.msk.f32.mxu0 %vm528_vm0, %v529_v1  ;;  %v62_v3 = vld [vmem:[#allocation5 + $0x8] sm:$0xff]  ;;  %v63_v4 = vld [vmem:[#allocation5 + $0x10] sm:$0xff]  ;;  %v64_v6 = vld [vmem:[#allocation5 + $0x18] sm:$0xff]  ;;  %s530_s7 = smov [#allocation8]  }
  0x38   :  { %395 = vmatprep.subr.bf16.mxu1 %v527_v0  ;;  %368 = vmatprep.mubr.msk.f32.mxu1 %vm528_vm0, %v529_v1  ;;  %v372_v5 = vpack.c.bf16 %v62_v3, %v61_v2  ;;  %v375_v7 = vpack.c.bf16 %v64_v6, %v63_v4  ;;  %v65_v8 = vld [vmem:[#allocation5 + $0x20] sm:$0xff]  ;;  %v66_v9 = vld [vmem:[#allocation5 + $0x28] sm:$0xff]  ;;  %v157_v12 = vld [vmem:[#allocation7 + $0x10] sm:$0xff]  ;;  %s255_s8 = sshll.u32 %s530_s7, 4  ;;  %s256_s8 = int_to_ptr.vmem [resolvable:$true] %s255_s8 }
  0x39   :  { %v155_v10 = vld [vmem:[#allocation7] sm:$0xff]  ;;  %v156_v11 = vld [vmem:[#allocation7 + $0x8] sm:$0xff]  ;;  %v158_v13 = vld [vmem:[#allocation7 + $0x18] sm:$0xff]  ;;  %v378_v14 = vpack.c.bf16 %v66_v9, %v65_v8  ;;  %s494_s9 = scalar_lea.vmem %s256_s8, 128  ;;  %p499_p11 = scmp.lt.s32.totalorder %s256_s8, %s256_s8 }
  0x3a   :  { %373 = vmatpush3.bf16.msra.mxu0 %v372_v5  ;;  %v396_v15 = vpack.c.bf16 %v156_v11, %v155_v10  ;;  %v67_v16 = vld [vmem:[#allocation5 + $0x30] sm:$0xff]  ;;  %v68_v17 = vld [vmem:[#allocation5 + $0x38] sm:$0xff]  ;;  %v399_v18 = vpack.c.bf16 %v158_v13, %v157_v12  ;;  %v159_v19 = vld [vmem:[#allocation7 + $0x20] sm:$0xff]  ;;  %p495_p10 = scmp.ne.s32.totalorder %s256_s8, %s494_s9  ;;  %p500_p12 = scmp.lt.s32.totalorder %s494_s9, %s494_s9 }
  0x3b   :  { %374 = vmatprep.subr.bf16.mxu0 %v527_v0  ;;  %v160_v20 = vld [vmem:[#allocation7 + $0x28] sm:$0xff]  ;;  %v381_v21 = vpack.c.bf16 %v68_v17, %v67_v16  ;;  %v69_v22 = vld [vmem:[#allocation5 + $0x40] sm:$0xff]  ;;  %v161_v25 = vld [vmem:[#allocation7 + $0x30] sm:$0xff] }
  0x3c   :  { %397 = vmatpush3.bf16.msra.mxu1 %v396_v15  ;;  %v70_v23 = vld [vmem:[#allocation5 + $0x48] sm:$0xff]  ;;  %v402_v24 = vpack.c.bf16 %v160_v20, %v159_v19  ;;  %v162_v26 = vld [vmem:[#allocation7 + $0x38] sm:$0xff]  ;;  %v71_v28 = vld [vmem:[#allocation5 + $0x50] sm:$0xff]  ;;  %p501_p13 = por %p500_p12, %p499_p11 }
  0x3d   :  { %398 = vmatprep.subr.bf16.mxu1 %v527_v0  ;;  %v384_v27 = vpack.c.bf16 %v70_v23, %v69_v22  ;;  %v72_v29 = vld [vmem:[#allocation5 + $0x58] sm:$0xff]  ;;  %v405_v30 = vpack.c.bf16 %v162_v26, %v161_v25  ;;  %v163_v31 = vld [vmem:[#allocation7 + $0x40] sm:$0xff]  ;;  %v164_v32 = vld [vmem:[#allocation7 + $0x48] sm:$0xff] }
  0x3e   :  { %376 = vmatpush3.bf16.msra.mxu0 %v375_v7  ;;  %v387_v33 = vpack.c.bf16 %v72_v29, %v71_v28  ;;  %v73_v34 = vld [vmem:[#allocation5 + $0x60] sm:$0xff]  ;;  %v74_v35 = vld [vmem:[#allocation5 + $0x68] sm:$0xff]  ;;  %v408_v36 = vpack.c.bf16 %v164_v32, %v163_v31  ;;  %v165_v37 = vld [vmem:[#allocation7 + $0x50] sm:$0xff]  ;;  %p502_p0 = pnand %p501_p13, %p495_p10 }
  0x3f   :  { %377 = vmatprep.subr.bf16.mxu0 %v527_v0  ;;  %v166_v38 = vld [vmem:[#allocation7 + $0x58] sm:$0xff]  ;;  %v390_v39 = vpack.c.bf16 %v74_v35, %v73_v34  ;;  %v75_v40 = vld [vmem:[#allocation5 + $0x70] sm:$0xff]  ;;  %v167_v43 = vld [vmem:[#allocation7 + $0x60] sm:$0xff] }
  0x40   :  { %400 = vmatpush3.bf16.msra.mxu1 %v399_v18  ;;  %v76_v41 = vld [vmem:[#allocation5 + $0x78] sm:$0xff]  ;;  %v411_v42 = vpack.c.bf16 %v166_v38, %v165_v37  ;;  %v168_v44 = vld [vmem:[#allocation7 + $0x68] sm:$0xff]  ;;  %v169_v48 = vld [vmem:[#allocation7 + $0x70] sm:$0xff] }
  0x41   :  { %401 = vmatprep.subr.bf16.mxu1 %v527_v0  ;;  %v393_v45 = vpack.c.bf16 %v76_v41, %v75_v40  ;;  %v414_v46 = vpack.c.bf16 %v168_v44, %v167_v43  ;;  %v60_v47 = vld [vmem:[#allocation2] sm:$0xff] }
  0x42   :  { %379 = vmatpush3.bf16.msra.mxu0 %v378_v14  ;;  %v170_v49 = vld [vmem:[#allocation7 + $0x78] sm:$0xff] }
  0x43   :  { %380 = vmatprep.subr.bf16.mxu0 %v527_v0  ;;  %v417_v50 = vpack.c.bf16 %v170_v49, %v169_v48  ;;  %v265_v51 = vld [vmem:[%s639_s2] ss:$0 sm:$0xff] }
  0x44   :  { %403 = vmatpush3.bf16.msra.mxu1 %v402_v24  ;;  %v266_v56 = vld [vmem:[%s641_s4] ss:$0 sm:$0xff] }
  0x45   :  { %404 = vmatprep.subr.bf16.mxu1 %v527_v0 }
  0x46   :  { %382 = vmatpush3.bf16.msra.mxu0 %v381_v21 }
  0x47   :  { %383 = vmatprep.subr.bf16.mxu0 %v527_v0 }
  0x48   :  { %406 = vmatpush3.bf16.msra.mxu1 %v405_v30 }
  0x49   :  { %407 = vmatprep.subr.bf16.mxu1 %v527_v0 }
  0x4a   :  { %385 = vmatpush3.bf16.msra.mxu0 %v384_v27 }
  0x4b   :  { %386 = vmatprep.subr.bf16.mxu0 %v527_v0 }
  0x4c   :  { %409 = vmatpush3.bf16.msra.mxu1 %v408_v36 }
  0x4d   :  { %410 = vmatprep.subr.bf16.mxu1 %v527_v0 }
  0x4e   :  { %388 = vmatpush3.bf16.msra.mxu0 %v387_v33 }
  0x4f   :  { %389 = vmatprep.subr.bf16.mxu0 %v527_v0 }
  0x50   :  { %412 = vmatpush3.bf16.msra.mxu1 %v411_v42 }
  0x51   :  { %413 = vmatprep.subr.bf16.mxu1 %v527_v0 }
  0x52   :  { %391 = vmatpush3.bf16.msra.mxu0 %v390_v39 }
  0x53   :  { %392 = vmatprep.subr.bf16.mxu0 %v527_v0 }
  0x54   :  { %415 = vmatpush3.bf16.msra.mxu1 %v414_v46 }
  0x55   :  { %416 = vmatprep.subr.bf16.mxu1 %v527_v0 }
  0x56   :  { %394 = vmatpush3.bf16.msra.mxu0 %v393_v45 }
  0x58   :  { %418 = vmatpush3.bf16.msra.mxu1 %v417_v50 }
  0x59   :  { %334 = vmatmul.mubr.f32.vlgmr.msra.gmra.mrb[0].mxu0 %v60_v47 }
 0x12c   :  { %v150_v52 = vpop.f32.mrb[0].mxu0 }
 0x12d   :  { %v151_v53 = vadd.f32 %v265_v51, %v150_v52  ;;  %v335_v54 = vpop.f32.mrb[1].mxu0 }
 0x12f   :  { %v154_v55 = vmax.f32 %v151_v53, 0.0 }
 0x131   :  { %369 = vmatmul.mubr.f32.vlgmr.msra.gmra.mrb[0].mxu1 %v154_v55 }
 0x204   :  { %v244_v57 = vpop.f32.mrb[0].mxu1 }
 0x205   :  { %v245_v58 = vadd.f32 %v266_v56, %v244_v57  ;;  %v370_v59 = vpop.f32.mrb[1].mxu1 }
 0x207   :  { %248 = vst [vmem:[#allocation8] sm:$0xff] %v245_v58 }
 0x208   :  { %505 = shalt.err (!%p502_p0)
}
 0x209   :  { %s506_s11 = scalar_lea.hbm %s642_s5, 128 }
 0x20a   :  { %p507_p1 = scmp.ne.s32.totalorder %s642_s5, %s506_s11  ;;  %p510_p2 = scmp.lt.u32.totalorder %s506_s11, %s642_s5 }
 0x20c   :  { %p512_p3 = pnand %p510_p2, %p507_p1 }
 0x20e   :  { %515 = shalt.err (!%p512_p3)
}
 0x20f   :  { %258 = dma.vmem_to_hbm [thread:$0]  %s256_s8, 128, %s642_s5, [#allocation4]  }
 0x210   :  { %520 = dma.done.wait [#allocation4], 128  }
 0x211   :  { %521 = vsyncadd [#allocation4], 4294967168 }
 0x212   :  { %262 = vsyncpa [#allocation3], 1 }
 0x213   :  { %263 = vsyncpa [#allocation6], 1 }
 0x214   :  { %264 = vsyncpa [#allocation4], 1 }

</bundles_post_ra>
